<compile_context>
chip_gen: v7x
topology: tpu7x:2x2x1
jax: 0.10.0
libtpu: 0.0.40
codegen_flags: <defaults>
</compile_context>

<pallas_src>
import functools
import math

import jax
import jax.numpy as jnp
import numpy as np
from jax.experimental import pallas as pl
from jax.experimental.pallas import tpu as pltpu

# ----------------------------- configuration ------------------------------
B, S, D = 2, 8, 32          # batch, seq, inner_transformer_size
H = 4                       # n_heads
DH = D // H                 # per-head dim
FF = 64                     # inner_ff_size
EPS = 1e-5                  # nn.LayerNorm default eps

# dot_general dimension_numbers: contract the LAST dim of both operands (A @ B^T)
_NT = (((1,), (1,)), ((), ()))


# ------------------------------ Pallas kernel -----------------------------
def _encoder_layer_kernel(x_ref, w_attn_ref, vecs_ref, ff_w_ref, o_ref, *, n_heads):
    seq, d = x_ref.shape                      # one batch element: (S, D)
    dh = d // n_heads
    ff = ff_w_ref.shape[-1]

    x = x_ref[...]                            # (S, D)

    # Packed vector slab (static ref slices, lane offset 0 everywhere).
    g1 = vecs_ref[0:1, 0:d]
    b1 = vecs_ref[1:2, 0:d]
    g2 = vecs_ref[2:3, 0:d]
    b2 = vecs_ref[3:4, 0:d]
    bo = vecs_ref[4:5, 0:d]                   # = bo + bv @ Wo (v-bias folded by wrapper)
    bf1 = vecs_ref[5:6, 0:ff]
    bf2 = vecs_ref[6:7, 0:d]

    # ---- norm1 (LayerNorm, biased variance — matches PyTorch) ----
    mu = jnp.mean(x, axis=-1, keepdims=True)
    var = jnp.mean((x - mu) ** 2, axis=-1, keepdims=True)
    xn = (x - mu) * jax.lax.rsqrt(var + EPS) * g1 + b1

    # ---- multi-head attention, head-major weights, one batch element ----
    # TODO(synk): user-supplied mask (masked_fill(mask == 0, -1000.0)) not wired; mask=None only.
    attn = jnp.zeros((seq, d), jnp.float32)
    for hi in range(n_heads):                 # static unroll, n_heads is small
        wq = w_attn_ref[4 * hi + 0]           # (DH, D) = Wq_h^T, 1/sqrt(dh) folded in
        wk = w_attn_ref[4 * hi + 1]           # (DH, D) = Wk_h^T (k-bias dropped: softmax-invariant)
        wv = w_attn_ref[4 * hi + 2]           # (DH, D) = Wv_h^T (v-bias folded into bo)
        wo = w_attn_ref[4 * hi + 3]           # (DH, D) = this head's rows of Wo
        bq = vecs_ref[8 + hi:9 + hi, 0:dh]    # (1, DH), scaled q-bias

        qh = jax.lax.dot_general(xn, wq, _NT, preferred_element_type=jnp.float32) + bq
        kh = jax.lax.dot_general(xn, wk, _NT, preferred_element_type=jnp.float32)
        vh = jax.lax.dot_general(xn, wv, _NT, preferred_element_type=jnp.float32)

        sc = jax.lax.dot_general(qh, kh, _NT, preferred_element_type=jnp.float32)  # (S, S)
        sc = sc - jnp.max(sc, axis=-1, keepdims=True)
        p = jnp.exp(sc)
        p = p * pl.reciprocal(jnp.sum(p, axis=-1, keepdims=True), approx=True)
        oh = jnp.dot(p, vh, preferred_element_type=jnp.float32)                    # (S, DH)
        attn = attn + jnp.dot(oh, wo, preferred_element_type=jnp.float32)          # (S, D)

    x = x + attn + bo                         # residual 1 (dropout = identity)

    # ---- norm2 + feed-forward ----
    mu = jnp.mean(x, axis=-1, keepdims=True)
    var = jnp.mean((x - mu) ** 2, axis=-1, keepdims=True)
    xn = (x - mu) * jax.lax.rsqrt(var + EPS) * g2 + b2

    h1 = jnp.maximum(
        jnp.dot(xn, ff_w_ref[0], preferred_element_type=jnp.float32) + bf1, 0.0)   # (S, FF)
    yff = jax.lax.dot_general(h1, ff_w_ref[1], _NT,
                              preferred_element_type=jnp.float32) + bf2            # (S, D)

    o_ref[...] = x + yff                      # residual 2 (dropout = identity)


# ------------------------------- wrapper -----------------------------------
def encoder_layer(x, params, n_heads):
    """params: (g1, b1, Wqkv, bqkv, Wo, bo, g2, b2, W1, bf1, W2, bf2);
    2-D weights are (in, out) layout, 1-D vectors are shaped (1, N)."""
    bsz, seq, d = x.shape
    dh = d // n_heads
    g1, b1, wqkv, bqkv, wo, bo, g2, b2, w1, bf1, w2, bf2 = params
    ff = w1.shape[1]
    c = 1.0 / math.sqrt(dh)

    wq, wk, wv = wqkv[:, :d], wqkv[:, d:2 * d], wqkv[:, 2 * d:]
    bq, bk, bv = bqkv[0, :d], bqkv[0, d:2 * d], bqkv[0, 2 * d:]
    del bk  # k-bias only shifts every score row by a constant -> softmax-invariant (mask=None)

    # Head-major attention weights, each slot stored as (DH, D) so the kernel only
    # needs leading-axis indexing + last-dim-contracting dot_generals.
    slots = []
    for hi in range(n_heads):
        sl = slice(hi * dh, (hi + 1) * dh)
        slots.append((c * wq[:, sl]).T)       # Wq_h^T with softmax scale folded in
        slots.append(wk[:, sl].T)             # Wk_h^T
        slots.append(wv[:, sl].T)             # Wv_h^T
        slots.append(wo[sl, :])               # this head's rows of Wo
    w_attn = jnp.stack(slots).astype(jnp.float32)        # (4*H, DH, D)

    # All small vectors packed into a single (16, 128) slab (one DMA).
    vecs = jnp.zeros((16, 128), jnp.float32)
    vecs = vecs.at[0, :d].set(g1[0])
    vecs = vecs.at[1, :d].set(b1[0])
    vecs = vecs.at[2, :d].set(g2[0])
    vecs = vecs.at[3, :d].set(b2[0])
    vecs = vecs.at[4, :d].set(bo[0] + bv @ wo)            # v-bias folded through Wo
    vecs = vecs.at[5, :ff].set(bf1[0])
    vecs = vecs.at[6, :d].set(bf2[0])
    for hi in range(n_heads):
        vecs = vecs.at[8 + hi, :dh].set(c * bq[hi * dh:(hi + 1) * dh])

    ff_w = jnp.stack([w1, w2.T]).astype(jnp.float32)      # (2, D, FF): [W1, W2^T]

    x2d = x.reshape(bsz * seq, d).astype(jnp.float32)

    kernel = functools.partial(_encoder_layer_kernel, n_heads=n_heads)

    flops = 2 * bsz * seq * (4 * d * d + 2 * seq * d + 2 * d * ff)
    cost = pl.CostEstimate(
        flops=int(flops),
        transcendentals=int(bsz * (n_heads * seq * seq + 2 * seq)),
        bytes_accessed=int(4 * (2 * bsz * seq * d + w_attn.size + vecs.size + ff_w.size)),
    )

    out2d = pl.pallas_call(
        kernel,
        out_shape=jax.ShapeDtypeStruct((bsz * seq, d), jnp.float32),
        grid=(bsz,),
        in_specs=[
            pl.BlockSpec((seq, d), lambda bdx: (bdx, 0)),             # x: one batch per program
            pl.BlockSpec((4 * n_heads, dh, d), lambda bdx: (0, 0, 0)),  # weights: resident
            pl.BlockSpec((16, 128), lambda bdx: (0, 0)),
            pl.BlockSpec((2, d, ff), lambda bdx: (0, 0, 0)),
        ],
        out_specs=pl.BlockSpec((seq, d), lambda bdx: (bdx, 0)),
        compiler_params=pltpu.CompilerParams(dimension_semantics=("parallel",)),
        input_output_aliases={0: 0},
        cost_estimate=cost,
    )(x2d, w_attn, vecs, ff_w)

    return out2d.reshape(bsz, seq, d)


# ----------------------------- pure-JAX reference ---------------------------
def _layernorm_ref(x, g, b):
    mu = jnp.mean(x, axis=-1, keepdims=True)
    var = jnp.mean((x - mu) ** 2, axis=-1, keepdims=True)
    return (x - mu) / jnp.sqrt(var + EPS) * g + b


def encoder_layer_ref(x, params):
    g1, b1, wqkv, bqkv, wo, bo, g2, b2, w1, bf1, w2, bf2 = params
    x2 = _layernorm_ref(x, g1[0], b1[0])
    qkv = x2 @ wqkv + bqkv[0]
    q, k, v = qkv[..., :D], qkv[..., D:2 * D], qkv[..., 2 * D:]

    def split(t):  # (B, S, D) -> (B, H, S, DH)
        return t.reshape(t.shape[0], -1, H, DH).transpose(0, 2, 1, 3)

    q, k, v = split(q), split(k), split(v)
    s = jnp.einsum('bhqd,bhkd->bhqk', q, k) / math.sqrt(DH)
    p = jax.nn.softmax(s, axis=-1)
    o = jnp.einsum('bhqk,bhkd->bhqd', p, v)
    o = o.transpose(0, 2, 1, 3).reshape(x.shape[0], -1, D)
    o = o @ wo + bo[0]
    x = x + o
    x2 = _layernorm_ref(x, g2[0], b2[0])
    ffo = jnp.maximum(x2 @ w1 + bf1[0], 0.0) @ w2 + bf2[0]
    return x + ffo


# --------------------------------- main -------------------------------------
if __name__ == "__main__":
    key = jax.random.PRNGKey(0)
    keys = jax.random.split(key, 8)

    x = jax.random.normal(keys[0], (B, S, D), dtype=jnp.float32)

    # Deterministic synthetic parameters (nn.Linear weights pre-transposed to (in, out)).
    scale = 0.05
    g1 = jnp.ones((1, D), jnp.float32)
    b1 = jnp.zeros((1, D), jnp.float32)
    wqkv = scale * jax.random.normal(keys[1], (D, 3 * D), jnp.float32)
    bqkv = scale * jax.random.normal(keys[2], (1, 3 * D), jnp.float32)
    wo = scale * jax.random.normal(keys[3], (D, D), jnp.float32)
    bo = scale * jax.random.normal(keys[4], (1, D), jnp.float32)
    g2 = jnp.ones((1, D), jnp.float32)
    b2 = jnp.zeros((1, D), jnp.float32)
    w1 = scale * jax.random.normal(keys[5], (D, FF), jnp.float32)
    bf1 = scale * jax.random.normal(keys[6], (1, FF), jnp.float32)
    w2 = scale * jax.random.normal(keys[7], (FF, D), jnp.float32)
    bf2 = jnp.zeros((1, D), jnp.float32)

    params = (g1, b1, wqkv, bqkv, wo, bo, g2, b2, w1, bf1, w2, bf2)

    out = jax.block_until_ready(encoder_layer(x, params, n_heads=H))
    ref = jax.block_until_ready(encoder_layer_ref(x, params))
    np.testing.assert_allclose(np.asarray(out), np.asarray(ref), rtol=1e-2, atol=1e-2)

    print("KERNEL_OK")
</pallas_src>

<mosaic_0001>
module attributes {stable_mosaic.version = 11 : i64} {
  func.func @_encoder_layer_kernel(%arg0: i32, %arg1: memref<8x32xf32, #tpu.memory_space<vmem>>, %arg2: memref<16x8x32xf32, #tpu.memory_space<vmem>>, %arg3: memref<16x128xf32, #tpu.memory_space<vmem>>, %arg4: memref<2x32x64xf32, #tpu.memory_space<vmem>>, %arg5: memref<8x32xf32, #tpu.memory_space<vmem>>) attributes {dimension_semantics = [#tpu.dimension_semantics<parallel>], iteration_bounds = array<i64: 2>, scalar_prefetch = 0 : i64, scratch_operands = 0 : i64, tpu.core_type = #tpu.core_type<tc>, window_params = [{transform_indices = @transform_0, window_bounds = array<i64: 8, 32>}, {pipeline_mode = #tpu.pipeline_mode<synchronous>, transform_indices = @transform_1, window_bounds = array<i64: 16, 8, 32>}, {pipeline_mode = #tpu.pipeline_mode<synchronous>, transform_indices = @transform_2, window_bounds = array<i64: 16, 128>}, {pipeline_mode = #tpu.pipeline_mode<synchronous>, transform_indices = @transform_3, window_bounds = array<i64: 2, 32, 64>}, {transform_indices = @transform_4, window_bounds = array<i64: 8, 32>}]} {
    %c0 = arith.constant 0 : index
    %c0_0 = arith.constant 0 : index
    %0 = vector.load %arg1[%c0, %c0_0] : memref<8x32xf32, #tpu.memory_space<vmem>>, vector<8x32xf32>
    %c0_1 = arith.constant 0 : index
    %c0_2 = arith.constant 0 : index
    %1 = vector.load %arg3[%c0_1, %c0_2] : memref<16x128xf32, #tpu.memory_space<vmem>>, vector<1x32xf32>
    %c1 = arith.constant 1 : index
    %c0_3 = arith.constant 0 : index
    %2 = vector.load %arg3[%c1, %c0_3] : memref<16x128xf32, #tpu.memory_space<vmem>>, vector<1x32xf32>
    %c2 = arith.constant 2 : index
    %c0_4 = arith.constant 0 : index
    %3 = vector.load %arg3[%c2, %c0_4] : memref<16x128xf32, #tpu.memory_space<vmem>>, vector<1x32xf32>
    %c3 = arith.constant 3 : index
    %c0_5 = arith.constant 0 : index
    %4 = vector.load %arg3[%c3, %c0_5] : memref<16x128xf32, #tpu.memory_space<vmem>>, vector<1x32xf32>
    %c4 = arith.constant 4 : index
    %c0_6 = arith.constant 0 : index
    %5 = vector.load %arg3[%c4, %c0_6] : memref<16x128xf32, #tpu.memory_space<vmem>>, vector<1x32xf32>
    %c5 = arith.constant 5 : index
    %c0_7 = arith.constant 0 : index
    %6 = vector.load %arg3[%c5, %c0_7] : memref<16x128xf32, #tpu.memory_space<vmem>>, vector<1x64xf32>
    %c6 = arith.constant 6 : index
    %c0_8 = arith.constant 0 : index
    %7 = vector.load %arg3[%c6, %c0_8] : memref<16x128xf32, #tpu.memory_space<vmem>>, vector<1x32xf32>
    %cst = arith.constant dense<0.000000e+00> : vector<8xf32>
    %8 = vector.multi_reduction <add>, %0, %cst [1] : vector<8x32xf32> to vector<8xf32>
    %9 = vector.shape_cast %8 : vector<8xf32> to vector<8x1xf32>
    %cst_9 = arith.constant 3.200000e+01 : f32
    %10 = vector.broadcast %cst_9 : f32 to vector<8x1xf32>
    %11 = arith.divf %9, %10 : vector<8x1xf32>
    %12 = vector.broadcast %11 : vector<8x1xf32> to vector<8x32xf32>
    %13 = arith.subf %0, %12 : vector<8x32xf32>
    %14 = arith.mulf %13, %13 : vector<8x32xf32>
    %cst_10 = arith.constant dense<0.000000e+00> : vector<8xf32>
    %15 = vector.multi_reduction <add>, %14, %cst_10 [1] : vector<8x32xf32> to vector<8xf32>
    %16 = vector.shape_cast %15 : vector<8xf32> to vector<8x1xf32>
    %cst_11 = arith.constant 3.200000e+01 : f32
    %17 = vector.broadcast %cst_11 : f32 to vector<8x1xf32>
    %18 = arith.divf %16, %17 : vector<8x1xf32>
    %19 = vector.broadcast %11 : vector<8x1xf32> to vector<8x32xf32>
    %20 = arith.subf %0, %19 : vector<8x32xf32>
    %cst_12 = arith.constant 9.99999974E-6 : f32
    %21 = vector.broadcast %cst_12 : f32 to vector<8x1xf32>
    %22 = arith.addf %18, %21 : vector<8x1xf32>
    %23 = math.rsqrt %22 : vector<8x1xf32>
    %24 = vector.broadcast %23 : vector<8x1xf32> to vector<8x32xf32>
    %25 = arith.mulf %20, %24 : vector<8x32xf32>
    %26 = vector.broadcast %1 : vector<1x32xf32> to vector<8x32xf32>
    %27 = arith.mulf %25, %26 : vector<8x32xf32>
    %28 = vector.broadcast %2 : vector<1x32xf32> to vector<8x32xf32>
    %29 = arith.addf %27, %28 : vector<8x32xf32>
    %cst_13 = arith.constant 0.000000e+00 : f32
    %30 = vector.broadcast %cst_13 : f32 to vector<8x32xf32>
    %c0_14 = arith.constant 0 : index
    %c0_15 = arith.constant 0 : index
    %c0_16 = arith.constant 0 : index
    %31 = vector.load %arg2[%c0_14, %c0_15, %c0_16] : memref<16x8x32xf32, #tpu.memory_space<vmem>>, vector<1x8x32xf32>
    %32 = vector.shape_cast %31 : vector<1x8x32xf32> to vector<8x32xf32>
    %c1_17 = arith.constant 1 : index
    %c0_18 = arith.constant 0 : index
    %c0_19 = arith.constant 0 : index
    %33 = vector.load %arg2[%c1_17, %c0_18, %c0_19] : memref<16x8x32xf32, #tpu.memory_space<vmem>>, vector<1x8x32xf32>
    %34 = vector.shape_cast %33 : vector<1x8x32xf32> to vector<8x32xf32>
    %c2_20 = arith.constant 2 : index
    %c0_21 = arith.constant 0 : index
    %c0_22 = arith.constant 0 : index
    %35 = vector.load %arg2[%c2_20, %c0_21, %c0_22] : memref<16x8x32xf32, #tpu.memory_space<vmem>>, vector<1x8x32xf32>
    %36 = vector.shape_cast %35 : vector<1x8x32xf32> to vector<8x32xf32>
    %c3_23 = arith.constant 3 : index
    %c0_24 = arith.constant 0 : index
    %c0_25 = arith.constant 0 : index
    %37 = vector.load %arg2[%c3_23, %c0_24, %c0_25] : memref<16x8x32xf32, #tpu.memory_space<vmem>>, vector<1x8x32xf32>
    %38 = vector.shape_cast %37 : vector<1x8x32xf32> to vector<8x32xf32>
    %c8 = arith.constant 8 : index
    %c0_26 = arith.constant 0 : index
    %39 = vector.load %arg3[%c8, %c0_26] : memref<16x128xf32, #tpu.memory_space<vmem>>, vector<1x8xf32>
    %cst_27 = arith.constant dense<0.000000e+00> : vector<8x8xf32>
    %40 = tpu.matmul %29, %32, %cst_27 {dimension_numbers = #tpu.dot_dimension_numbers<[1], [1], [0], [0], [0, 0, 1, 0], [], []>} : vector<8x32xf32>, vector<8x32xf32>, vector<8x8xf32> -> vector<8x8xf32>
    %41 = vector.broadcast %39 : vector<1x8xf32> to vector<8x8xf32>
    %42 = arith.addf %40, %41 : vector<8x8xf32>
    %cst_28 = arith.constant dense<0.000000e+00> : vector<8x8xf32>
    %43 = tpu.matmul %29, %34, %cst_28 {dimension_numbers = #tpu.dot_dimension_numbers<[1], [1], [0], [0], [0, 0, 1, 0], [], []>} : vector<8x32xf32>, vector<8x32xf32>, vector<8x8xf32> -> vector<8x8xf32>
    %cst_29 = arith.constant dense<0.000000e+00> : vector<8x8xf32>
    %44 = tpu.matmul %29, %36, %cst_29 {dimension_numbers = #tpu.dot_dimension_numbers<[1], [1], [0], [0], [0, 0, 1, 0], [], []>} : vector<8x32xf32>, vector<8x32xf32>, vector<8x8xf32> -> vector<8x8xf32>
    %cst_30 = arith.constant dense<0.000000e+00> : vector<8x8xf32>
    %45 = tpu.matmul %42, %43, %cst_30 {dimension_numbers = #tpu.dot_dimension_numbers<[1], [1], [0], [0], [0, 0, 1, 0], [], []>} : vector<8x8xf32>, vector<8x8xf32>, vector<8x8xf32> -> vector<8x8xf32>
    %cst_31 = arith.constant dense<0xFF800000> : vector<8xf32>
    %46 = vector.multi_reduction <maximumf>, %45, %cst_31 [1] : vector<8x8xf32> to vector<8xf32>
    %47 = vector.shape_cast %46 : vector<8xf32> to vector<8x1xf32>
    %48 = vector.broadcast %47 : vector<8x1xf32> to vector<8x8xf32>
    %49 = arith.subf %45, %48 : vector<8x8xf32>
    %50 = math.exp %49 : vector<8x8xf32>
    %cst_32 = arith.constant dense<0.000000e+00> : vector<8xf32>
    %51 = vector.multi_reduction <add>, %50, %cst_32 [1] : vector<8x8xf32> to vector<8xf32>
    %52 = vector.shape_cast %51 : vector<8xf32> to vector<8x1xf32>
    %53 = tpu.reciprocal %52 {approx = true} : vector<8x1xf32> -> vector<8x1xf32>
    %54 = vector.broadcast %53 : vector<8x1xf32> to vector<8x8xf32>
    %55 = arith.mulf %50, %54 : vector<8x8xf32>
    %cst_33 = arith.constant dense<0.000000e+00> : vector<8x8xf32>
    %56 = tpu.matmul %55, %44, %cst_33 {dimension_numbers = #tpu.dot_dimension_numbers<[1], [0], [0], [1], [0, 0, 1, 1], [], []>} : vector<8x8xf32>, vector<8x8xf32>, vector<8x8xf32> -> vector<8x8xf32>
    %cst_34 = arith.constant dense<0.000000e+00> : vector<8x32xf32>
    %57 = tpu.matmul %56, %38, %cst_34 {dimension_numbers = #tpu.dot_dimension_numbers<[1], [0], [0], [1], [0, 0, 1, 1], [], []>} : vector<8x8xf32>, vector<8x32xf32>, vector<8x32xf32> -> vector<8x32xf32>
    %58 = arith.addf %30, %57 : vector<8x32xf32>
    %c4_35 = arith.constant 4 : index
    %c0_36 = arith.constant 0 : index
    %c0_37 = arith.constant 0 : index
    %59 = vector.load %arg2[%c4_35, %c0_36, %c0_37] : memref<16x8x32xf32, #tpu.memory_space<vmem>>, vector<1x8x32xf32>
    %60 = vector.shape_cast %59 : vector<1x8x32xf32> to vector<8x32xf32>
    %c5_38 = arith.constant 5 : index
    %c0_39 = arith.constant 0 : index
    %c0_40 = arith.constant 0 : index
    %61 = vector.load %arg2[%c5_38, %c0_39, %c0_40] : memref<16x8x32xf32, #tpu.memory_space<vmem>>, vector<1x8x32xf32>
    %62 = vector.shape_cast %61 : vector<1x8x32xf32> to vector<8x32xf32>
    %c6_41 = arith.constant 6 : index
    %c0_42 = arith.constant 0 : index
    %c0_43 = arith.constant 0 : index
    %63 = vector.load %arg2[%c6_41, %c0_42, %c0_43] : memref<16x8x32xf32, #tpu.memory_space<vmem>>, vector<1x8x32xf32>
    %64 = vector.shape_cast %63 : vector<1x8x32xf32> to vector<8x32xf32>
    %c7 = arith.constant 7 : index
    %c0_44 = arith.constant 0 : index
    %c0_45 = arith.constant 0 : index
    %65 = vector.load %arg2[%c7, %c0_44, %c0_45] : memref<16x8x32xf32, #tpu.memory_space<vmem>>, vector<1x8x32xf32>
    %66 = vector.shape_cast %65 : vector<1x8x32xf32> to vector<8x32xf32>
    %c9 = arith.constant 9 : index
    %c0_46 = arith.constant 0 : index
    %67 = vector.load %arg3[%c9, %c0_46] : memref<16x128xf32, #tpu.memory_space<vmem>>, vector<1x8xf32>
    %cst_47 = arith.constant dense<0.000000e+00> : vector<8x8xf32>
    %68 = tpu.matmul %29, %60, %cst_47 {dimension_numbers = #tpu.dot_dimension_numbers<[1], [1], [0], [0], [0, 0, 1, 0], [], []>} : vector<8x32xf32>, vector<8x32xf32>, vector<8x8xf32> -> vector<8x8xf32>
    %69 = vector.broadcast %67 : vector<1x8xf32> to vector<8x8xf32>
    %70 = arith.addf %68, %69 : vector<8x8xf32>
    %cst_48 = arith.constant dense<0.000000e+00> : vector<8x8xf32>
    %71 = tpu.matmul %29, %62, %cst_48 {dimension_numbers = #tpu.dot_dimension_numbers<[1], [1], [0], [0], [0, 0, 1, 0], [], []>} : vector<8x32xf32>, vector<8x32xf32>, vector<8x8xf32> -> vector<8x8xf32>
    %cst_49 = arith.constant dense<0.000000e+00> : vector<8x8xf32>
    %72 = tpu.matmul %29, %64, %cst_49 {dimension_numbers = #tpu.dot_dimension_numbers<[1], [1], [0], [0], [0, 0, 1, 0], [], []>} : vector<8x32xf32>, vector<8x32xf32>, vector<8x8xf32> -> vector<8x8xf32>
    %cst_50 = arith.constant dense<0.000000e+00> : vector<8x8xf32>
    %73 = tpu.matmul %70, %71, %cst_50 {dimension_numbers = #tpu.dot_dimension_numbers<[1], [1], [0], [0], [0, 0, 1, 0], [], []>} : vector<8x8xf32>, vector<8x8xf32>, vector<8x8xf32> -> vector<8x8xf32>
    %cst_51 = arith.constant dense<0xFF800000> : vector<8xf32>
    %74 = vector.multi_reduction <maximumf>, %73, %cst_51 [1] : vector<8x8xf32> to vector<8xf32>
    %75 = vector.shape_cast %74 : vector<8xf32> to vector<8x1xf32>
    %76 = vector.broadcast %75 : vector<8x1xf32> to vector<8x8xf32>
    %77 = arith.subf %73, %76 : vector<8x8xf32>
    %78 = math.exp %77 : vector<8x8xf32>
    %cst_52 = arith.constant dense<0.000000e+00> : vector<8xf32>
    %79 = vector.multi_reduction <add>, %78, %cst_52 [1] : vector<8x8xf32> to vector<8xf32>
    %80 = vector.shape_cast %79 : vector<8xf32> to vector<8x1xf32>
    %81 = tpu.reciprocal %80 {approx = true} : vector<8x1xf32> -> vector<8x1xf32>
    %82 = vector.broadcast %81 : vector<8x1xf32> to vector<8x8xf32>
    %83 = arith.mulf %78, %82 : vector<8x8xf32>
    %cst_53 = arith.constant dense<0.000000e+00> : vector<8x8xf32>
    %84 = tpu.matmul %83, %72, %cst_53 {dimension_numbers = #tpu.dot_dimension_numbers<[1], [0], [0], [1], [0, 0, 1, 1], [], []>} : vector<8x8xf32>, vector<8x8xf32>, vector<8x8xf32> -> vector<8x8xf32>
    %cst_54 = arith.constant dense<0.000000e+00> : vector<8x32xf32>
    %85 = tpu.matmul %84, %66, %cst_54 {dimension_numbers = #tpu.dot_dimension_numbers<[1], [0], [0], [1], [0, 0, 1, 1], [], []>} : vector<8x8xf32>, vector<8x32xf32>, vector<8x32xf32> -> vector<8x32xf32>
    %86 = arith.addf %58, %85 : vector<8x32xf32>
    %c8_55 = arith.constant 8 : index
    %c0_56 = arith.constant 0 : index
    %c0_57 = arith.constant 0 : index
    %87 = vector.load %arg2[%c8_55, %c0_56, %c0_57] : memref<16x8x32xf32, #tpu.memory_space<vmem>>, vector<1x8x32xf32>
    %88 = vector.shape_cast %87 : vector<1x8x32xf32> to vector<8x32xf32>
    %c9_58 = arith.constant 9 : index
    %c0_59 = arith.constant 0 : index
    %c0_60 = arith.constant 0 : index
    %89 = vector.load %arg2[%c9_58, %c0_59, %c0_60] : memref<16x8x32xf32, #tpu.memory_space<vmem>>, vector<1x8x32xf32>
    %90 = vector.shape_cast %89 : vector<1x8x32xf32> to vector<8x32xf32>
    %c10 = arith.constant 10 : index
    %c0_61 = arith.constant 0 : index
    %c0_62 = arith.constant 0 : index
    %91 = vector.load %arg2[%c10, %c0_61, %c0_62] : memref<16x8x32xf32, #tpu.memory_space<vmem>>, vector<1x8x32xf32>
    %92 = vector.shape_cast %91 : vector<1x8x32xf32> to vector<8x32xf32>
    %c11 = arith.constant 11 : index
    %c0_63 = arith.constant 0 : index
    %c0_64 = arith.constant 0 : index
    %93 = vector.load %arg2[%c11, %c0_63, %c0_64] : memref<16x8x32xf32, #tpu.memory_space<vmem>>, vector<1x8x32xf32>
    %94 = vector.shape_cast %93 : vector<1x8x32xf32> to vector<8x32xf32>
    %c10_65 = arith.constant 10 : index
    %c0_66 = arith.constant 0 : index
    %95 = vector.load %arg3[%c10_65, %c0_66] : memref<16x128xf32, #tpu.memory_space<vmem>>, vector<1x8xf32>
    %cst_67 = arith.constant dense<0.000000e+00> : vector<8x8xf32>
    %96 = tpu.matmul %29, %88, %cst_67 {dimension_numbers = #tpu.dot_dimension_numbers<[1], [1], [0], [0], [0, 0, 1, 0], [], []>} : vector<8x32xf32>, vector<8x32xf32>, vector<8x8xf32> -> vector<8x8xf32>
    %97 = vector.broadcast %95 : vector<1x8xf32> to vector<8x8xf32>
    %98 = arith.addf %96, %97 : vector<8x8xf32>
    %cst_68 = arith.constant dense<0.000000e+00> : vector<8x8xf32>
    %99 = tpu.matmul %29, %90, %cst_68 {dimension_numbers = #tpu.dot_dimension_numbers<[1], [1], [0], [0], [0, 0, 1, 0], [], []>} : vector<8x32xf32>, vector<8x32xf32>, vector<8x8xf32> -> vector<8x8xf32>
    %cst_69 = arith.constant dense<0.000000e+00> : vector<8x8xf32>
    %100 = tpu.matmul %29, %92, %cst_69 {dimension_numbers = #tpu.dot_dimension_numbers<[1], [1], [0], [0], [0, 0, 1, 0], [], []>} : vector<8x32xf32>, vector<8x32xf32>, vector<8x8xf32> -> vector<8x8xf32>
    %cst_70 = arith.constant dense<0.000000e+00> : vector<8x8xf32>
    %101 = tpu.matmul %98, %99, %cst_70 {dimension_numbers = #tpu.dot_dimension_numbers<[1], [1], [0], [0], [0, 0, 1, 0], [], []>} : vector<8x8xf32>, vector<8x8xf32>, vector<8x8xf32> -> vector<8x8xf32>
    %cst_71 = arith.constant dense<0xFF800000> : vector<8xf32>
    %102 = vector.multi_reduction <maximumf>, %101, %cst_71 [1] : vector<8x8xf32> to vector<8xf32>
    %103 = vector.shape_cast %102 : vector<8xf32> to vector<8x1xf32>
    %104 = vector.broadcast %103 : vector<8x1xf32> to vector<8x8xf32>
    %105 = arith.subf %101, %104 : vector<8x8xf32>
    %106 = math.exp %105 : vector<8x8xf32>
    %cst_72 = arith.constant dense<0.000000e+00> : vector<8xf32>
    %107 = vector.multi_reduction <add>, %106, %cst_72 [1] : vector<8x8xf32> to vector<8xf32>
    %108 = vector.shape_cast %107 : vector<8xf32> to vector<8x1xf32>
    %109 = tpu.reciprocal %108 {approx = true} : vector<8x1xf32> -> vector<8x1xf32>
    %110 = vector.broadcast %109 : vector<8x1xf32> to vector<8x8xf32>
    %111 = arith.mulf %106, %110 : vector<8x8xf32>
    %cst_73 = arith.constant dense<0.000000e+00> : vector<8x8xf32>
    %112 = tpu.matmul %111, %100, %cst_73 {dimension_numbers = #tpu.dot_dimension_numbers<[1], [0], [0], [1], [0, 0, 1, 1], [], []>} : vector<8x8xf32>, vector<8x8xf32>, vector<8x8xf32> -> vector<8x8xf32>
    %cst_74 = arith.constant dense<0.000000e+00> : vector<8x32xf32>
    %113 = tpu.matmul %112, %94, %cst_74 {dimension_numbers = #tpu.dot_dimension_numbers<[1], [0], [0], [1], [0, 0, 1, 1], [], []>} : vector<8x8xf32>, vector<8x32xf32>, vector<8x32xf32> -> vector<8x32xf32>
    %114 = arith.addf %86, %113 : vector<8x32xf32>
    %c12 = arith.constant 12 : index
    %c0_75 = arith.constant 0 : index
    %c0_76 = arith.constant 0 : index
    %115 = vector.load %arg2[%c12, %c0_75, %c0_76] : memref<16x8x32xf32, #tpu.memory_space<vmem>>, vector<1x8x32xf32>
    %116 = vector.shape_cast %115 : vector<1x8x32xf32> to vector<8x32xf32>
    %c13 = arith.constant 13 : index
    %c0_77 = arith.constant 0 : index
    %c0_78 = arith.constant 0 : index
    %117 = vector.load %arg2[%c13, %c0_77, %c0_78] : memref<16x8x32xf32, #tpu.memory_space<vmem>>, vector<1x8x32xf32>
    %118 = vector.shape_cast %117 : vector<1x8x32xf32> to vector<8x32xf32>
    %c14 = arith.constant 14 : index
    %c0_79 = arith.constant 0 : index
    %c0_80 = arith.constant 0 : index
    %119 = vector.load %arg2[%c14, %c0_79, %c0_80] : memref<16x8x32xf32, #tpu.memory_space<vmem>>, vector<1x8x32xf32>
    %120 = vector.shape_cast %119 : vector<1x8x32xf32> to vector<8x32xf32>
    %c15 = arith.constant 15 : index
    %c0_81 = arith.constant 0 : index
    %c0_82 = arith.constant 0 : index
    %121 = vector.load %arg2[%c15, %c0_81, %c0_82] : memref<16x8x32xf32, #tpu.memory_space<vmem>>, vector<1x8x32xf32>
    %122 = vector.shape_cast %121 : vector<1x8x32xf32> to vector<8x32xf32>
    %c11_83 = arith.constant 11 : index
    %c0_84 = arith.constant 0 : index
    %123 = vector.load %arg3[%c11_83, %c0_84] : memref<16x128xf32, #tpu.memory_space<vmem>>, vector<1x8xf32>
    %cst_85 = arith.constant dense<0.000000e+00> : vector<8x8xf32>
    %124 = tpu.matmul %29, %116, %cst_85 {dimension_numbers = #tpu.dot_dimension_numbers<[1], [1], [0], [0], [0, 0, 1, 0], [], []>} : vector<8x32xf32>, vector<8x32xf32>, vector<8x8xf32> -> vector<8x8xf32>
    %125 = vector.broadcast %123 : vector<1x8xf32> to vector<8x8xf32>
    %126 = arith.addf %124, %125 : vector<8x8xf32>
    %cst_86 = arith.constant dense<0.000000e+00> : vector<8x8xf32>
    %127 = tpu.matmul %29, %118, %cst_86 {dimension_numbers = #tpu.dot_dimension_numbers<[1], [1], [0], [0], [0, 0, 1, 0], [], []>} : vector<8x32xf32>, vector<8x32xf32>, vector<8x8xf32> -> vector<8x8xf32>
    %cst_87 = arith.constant dense<0.000000e+00> : vector<8x8xf32>
    %128 = tpu.matmul %29, %120, %cst_87 {dimension_numbers = #tpu.dot_dimension_numbers<[1], [1], [0], [0], [0, 0, 1, 0], [], []>} : vector<8x32xf32>, vector<8x32xf32>, vector<8x8xf32> -> vector<8x8xf32>
    %cst_88 = arith.constant dense<0.000000e+00> : vector<8x8xf32>
    %129 = tpu.matmul %126, %127, %cst_88 {dimension_numbers = #tpu.dot_dimension_numbers<[1], [1], [0], [0], [0, 0, 1, 0], [], []>} : vector<8x8xf32>, vector<8x8xf32>, vector<8x8xf32> -> vector<8x8xf32>
    %cst_89 = arith.constant dense<0xFF800000> : vector<8xf32>
    %130 = vector.multi_reduction <maximumf>, %129, %cst_89 [1] : vector<8x8xf32> to vector<8xf32>
    %131 = vector.shape_cast %130 : vector<8xf32> to vector<8x1xf32>
    %132 = vector.broadcast %131 : vector<8x1xf32> to vector<8x8xf32>
    %133 = arith.subf %129, %132 : vector<8x8xf32>
    %134 = math.exp %133 : vector<8x8xf32>
    %cst_90 = arith.constant dense<0.000000e+00> : vector<8xf32>
    %135 = vector.multi_reduction <add>, %134, %cst_90 [1] : vector<8x8xf32> to vector<8xf32>
    %136 = vector.shape_cast %135 : vector<8xf32> to vector<8x1xf32>
    %137 = tpu.reciprocal %136 {approx = true} : vector<8x1xf32> -> vector<8x1xf32>
    %138 = vector.broadcast %137 : vector<8x1xf32> to vector<8x8xf32>
    %139 = arith.mulf %134, %138 : vector<8x8xf32>
    %cst_91 = arith.constant dense<0.000000e+00> : vector<8x8xf32>
    %140 = tpu.matmul %139, %128, %cst_91 {dimension_numbers = #tpu.dot_dimension_numbers<[1], [0], [0], [1], [0, 0, 1, 1], [], []>} : vector<8x8xf32>, vector<8x8xf32>, vector<8x8xf32> -> vector<8x8xf32>
    %cst_92 = arith.constant dense<0.000000e+00> : vector<8x32xf32>
    %141 = tpu.matmul %140, %122, %cst_92 {dimension_numbers = #tpu.dot_dimension_numbers<[1], [0], [0], [1], [0, 0, 1, 1], [], []>} : vector<8x8xf32>, vector<8x32xf32>, vector<8x32xf32> -> vector<8x32xf32>
    %142 = arith.addf %114, %141 : vector<8x32xf32>
    %143 = arith.addf %0, %142 : vector<8x32xf32>
    %144 = vector.broadcast %5 : vector<1x32xf32> to vector<8x32xf32>
    %145 = arith.addf %143, %144 : vector<8x32xf32>
    %cst_93 = arith.constant dense<0.000000e+00> : vector<8xf32>
    %146 = vector.multi_reduction <add>, %145, %cst_93 [1] : vector<8x32xf32> to vector<8xf32>
    %147 = vector.shape_cast %146 : vector<8xf32> to vector<8x1xf32>
    %cst_94 = arith.constant 3.200000e+01 : f32
    %148 = vector.broadcast %cst_94 : f32 to vector<8x1xf32>
    %149 = arith.divf %147, %148 : vector<8x1xf32>
    %150 = vector.broadcast %149 : vector<8x1xf32> to vector<8x32xf32>
    %151 = arith.subf %145, %150 : vector<8x32xf32>
    %152 = arith.mulf %151, %151 : vector<8x32xf32>
    %cst_95 = arith.constant dense<0.000000e+00> : vector<8xf32>
    %153 = vector.multi_reduction <add>, %152, %cst_95 [1] : vector<8x32xf32> to vector<8xf32>
    %154 = vector.shape_cast %153 : vector<8xf32> to vector<8x1xf32>
    %cst_96 = arith.constant 3.200000e+01 : f32
    %155 = vector.broadcast %cst_96 : f32 to vector<8x1xf32>
    %156 = arith.divf %154, %155 : vector<8x1xf32>
    %157 = vector.broadcast %149 : vector<8x1xf32> to vector<8x32xf32>
    %158 = arith.subf %145, %157 : vector<8x32xf32>
    %cst_97 = arith.constant 9.99999974E-6 : f32
    %159 = vector.broadcast %cst_97 : f32 to vector<8x1xf32>
    %160 = arith.addf %156, %159 : vector<8x1xf32>
    %161 = math.rsqrt %160 : vector<8x1xf32>
    %162 = vector.broadcast %161 : vector<8x1xf32> to vector<8x32xf32>
    %163 = arith.mulf %158, %162 : vector<8x32xf32>
    %164 = vector.broadcast %3 : vector<1x32xf32> to vector<8x32xf32>
    %165 = arith.mulf %163, %164 : vector<8x32xf32>
    %166 = vector.broadcast %4 : vector<1x32xf32> to vector<8x32xf32>
    %167 = arith.addf %165, %166 : vector<8x32xf32>
    %c0_98 = arith.constant 0 : index
    %c0_99 = arith.constant 0 : index
    %c0_100 = arith.constant 0 : index
    %168 = vector.load %arg4[%c0_98, %c0_99, %c0_100] : memref<2x32x64xf32, #tpu.memory_space<vmem>>, vector<1x32x64xf32>
    %169 = vector.shape_cast %168 : vector<1x32x64xf32> to vector<32x64xf32>
    %cst_101 = arith.constant dense<0.000000e+00> : vector<8x64xf32>
    %170 = tpu.matmul %167, %169, %cst_101 {dimension_numbers = #tpu.dot_dimension_numbers<[1], [0], [0], [1], [0, 0, 1, 1], [], []>} : vector<8x32xf32>, vector<32x64xf32>, vector<8x64xf32> -> vector<8x64xf32>
    %171 = vector.broadcast %6 : vector<1x64xf32> to vector<8x64xf32>
    %172 = arith.addf %170, %171 : vector<8x64xf32>
    %cst_102 = arith.constant 0.000000e+00 : f32
    %173 = vector.broadcast %cst_102 : f32 to vector<8x64xf32>
    %174 = arith.maximumf %172, %173 : vector<8x64xf32>
    %c1_103 = arith.constant 1 : index
    %c0_104 = arith.constant 0 : index
    %c0_105 = arith.constant 0 : index
    %175 = vector.load %arg4[%c1_103, %c0_104, %c0_105] : memref<2x32x64xf32, #tpu.memory_space<vmem>>, vector<1x32x64xf32>
    %176 = vector.shape_cast %175 : vector<1x32x64xf32> to vector<32x64xf32>
    %cst_106 = arith.constant dense<0.000000e+00> : vector<8x32xf32>
    %177 = tpu.matmul %174, %176, %cst_106 {dimension_numbers = #tpu.dot_dimension_numbers<[1], [1], [0], [0], [0, 0, 1, 0], [], []>} : vector<8x64xf32>, vector<32x64xf32>, vector<8x32xf32> -> vector<8x32xf32>
    %178 = vector.broadcast %7 : vector<1x32xf32> to vector<8x32xf32>
    %179 = arith.addf %177, %178 : vector<8x32xf32>
    %180 = arith.addf %145, %179 : vector<8x32xf32>
    %c0_107 = arith.constant 0 : index
    %c0_108 = arith.constant 0 : index
    %181 = vector.load %arg5[%c0_107, %c0_108] : memref<8x32xf32, #tpu.memory_space<vmem>>, vector<8x32xf32>
    tpu.vector_store %arg5[%c0_107, %c0_108], %180 {strides = array<i32>} : memref<8x32xf32, #tpu.memory_space<vmem>>, vector<8x32xf32>,
    return
  }
  func.func @transform_0(%arg0: i32) -> (i32, i32) {
    %c0_i32 = arith.constant 0 : i32
    %c0_i32_0 = arith.constant 0 : i32
    return %arg0, %c0_i32 : i32, i32
  }
  func.func @transform_1(%arg0: i32) -> (i32, i32, i32) {
    %c0_i32 = arith.constant 0 : i32
    %c0_i32_0 = arith.constant 0 : i32
    %c0_i32_1 = arith.constant 0 : i32
    %c0_i32_2 = arith.constant 0 : i32
    return %c0_i32, %c0_i32_0, %c0_i32_1 : i32, i32, i32
  }
  func.func @transform_2(%arg0: i32) -> (i32, i32) {
    %c0_i32 = arith.constant 0 : i32
    %c0_i32_0 = arith.constant 0 : i32
    %c0_i32_1 = arith.constant 0 : i32
    return %c0_i32, %c0_i32_0 : i32, i32
  }
  func.func @transform_3(%arg0: i32) -> (i32, i32, i32) {
    %c0_i32 = arith.constant 0 : i32
    %c0_i32_0 = arith.constant 0 : i32
    %c0_i32_1 = arith.constant 0 : i32
    %c0_i32_2 = arith.constant 0 : i32
    return %c0_i32, %c0_i32_0, %c0_i32_1 : i32, i32, i32
  }
  func.func @transform_4(%arg0: i32) -> (i32, i32) {
    %c0_i32 = arith.constant 0 : i32
    %c0_i32_0 = arith.constant 0 : i32
    return %arg0, %c0_i32 : i32, i32
  }
}

</mosaic_0001>

<bundles_post_ra>
// kernel: tpu_custom_call.1
= control target key start
LH: loop header
LB: loop body
LE: loop exit
PB: predicated region body
PF: predicated region fallthrough
CT: control target
= control target key end

     0   :  { %9 = vsyncpa [#allocation3], 0  ;;  %s3440_s0 = inlined_call_operand.hbm [shape: f32[16,32], index: 0, kind: input, shape index: {}, may-alias: {0,4}]   ;;  %s3441_s1 = inlined_call_operand.hbm [shape: f32[16,8,32], index: 1, kind: input, shape index: {}]   ;;  %s3442_s2 = inlined_call_operand.vmem [shape: f32[16,128], index: 2, kind: input, shape index: {}]   ;;  %s3443_s3 = inlined_call_operand.hbm [shape: f32[2,32,64], index: 3, kind: input, shape index: {}]   ;;  %s3444_s4 = inlined_call_operand.hbm [shape: f32[16,32], index: 4, kind: output, shape index: {}, may-alias: {0,4}]  }
   0x1   :  { %11 = vsyncpa [#allocation3 + $0x1], 0 }
   0x2   :  { %12 = vsyncpa [#allocation6], 0 }
   0x3   :  { %13 = vsyncpa [#allocation4], 0 }
   0x4   :  { %15 = vsyncpa [#allocation4 + $0x1], 0  ;;  %s3022_s15 = smov 0   ;;  %s3024_s16 = smov 0  }
   0x5   :  { %s3026_s17 = smov 0   ;;  %s3028_s18 = smov 0  }
   0x6 LB: > { %s3043_s19 = sadd.s32 4294967295, %s2986_s18   ;;  %s2451_s20 = sadd.s32 4294967294, %s2986_s18   ;;  %s2986_s18 = sphi %s3028_s18, %s3464_s18   ;;  %s2982_s17 = sphi %s3026_s17, %s3463_s17   ;;  %s2978_s16 = sphi %s3024_s16, %s3462_s16   ;;  %s2974_s15 = sphi %s3022_s15, %s3461_s15  }
   0x7   : > { %p41_p0 = scmp.ne.s32.totalorder %s2978_s16, %s2974_s15  ;;  %p3445_p1 = scmp.eq.s32.totalorder %s3043_s19, 0 }
   0x8   : > { %p134_p3 = scmp.eq.s32.totalorder %s2451_s20, 1  ;;  %p2452_p5 = scmp.ge.s32.totalorder %s2986_s18, 1 }
   0x9   : > { %p3052_p4 = por %p3445_p1, %p41_p0  ;;  %p141_p7 = scmp.lt.s32.totalorder %s2986_s18, 3 }
   0xa   : > { %p3057_p6 = por %p134_p3, %p41_p0  ;;  %s2988_s24 = smov [#allocation5]  }
   0xb   : > { %s3448_s21 = scalar_select %p3052_p4, 1, 0 }
   0xc   : > { %s3449_s22 = scalar_select %p3057_p6, 1, 0 }
   0xd   : > { %p3062_p8 = pnand %p2452_p5, %p141_p7  ;;  %s153_s25 = sshll.u32 %s2988_s24, 4  ;;  %s3066_s25 = int_to_ptr.vmem [resolvable:$true] %s153_s25 }
   0xe   : > { %s2989_s27 = smov [#allocation7]   ;;  %s2830_s5 = scalar_lea.hbm %s3441_s1, 2048 }
   0xf   : > { %p2750_p9 = pneg %p3062_p8  ;;  %s169_s28 = sshll.u32 %s2989_s27, 4  ;;  %s3077_s28 = int_to_ptr.vmem [resolvable:$true] %s169_s28 }
  0x10   : > { %p2831_p12 = scmp.ne.s32.totalorder %s3441_s1, %s2830_s5  ;;  %p2837_p5 = scmp.lt.u32.totalorder %s2830_s5, %s3441_s1 }
  0x11   : > { %p3073_p11 = pnand %p2750_p9, %p3445_p1 }
  0x13   : > { %p2832_p13 = pneg %p3073_p11 }
  0x15   : > { %p2833_p0 = pnand %p2832_p13, %p2831_p12 }
  0x17   : > { %p2834_p3 = pneg %p2833_p0 }
  0x19   : > { %p2839_p7 = pnand %p2837_p5, %p2834_p3 }
  0x1b   : > { %2842 = shalt.err (!%p2839_p7)
}
  0x1c   : > { %s2843_s10 = scalar_lea.vmem %s3066_s25, 2048  ;;  %p2851_p2 = scmp.lt.s32.totalorder %s3066_s25, %s3066_s25 }
  0x1d   : > { %p2844_p9 = scmp.ne.s32.totalorder %s3066_s25, %s2843_s10  ;;  %p2852_p12 = scmp.lt.s32.totalorder %s2843_s10, %s2843_s10 }
  0x1f   : > { %p2846_p10 = pnand %p2844_p9, %p2832_p13  ;;  %p2853_p0 = por %p2852_p12, %p2851_p2 }
  0x21   : > { %p2847_p1 = pneg %p2846_p10 }
  0x23   : > { %p2854_p6 = pnand %p2853_p0, %p2847_p1 }
  0x25   : > { %2857 = shalt.err (!%p2854_p6)
}
  0x26   : > { %s2990_s11 = smov 128   ;;  %s2991_s12 = smov 8  }
  0x27   : > { %2753 = dma.hbm_to_vmem [thread:$0]  (!%p3073_p11), %s3441_s1, 2048, %s3066_s25, [#allocation6], %s2990_s11, %s2990_s11, %s2991_s12  }
  0x28   : > { %s2858_s27 = scalar_lea.hbm %s3443_s3, 1024 }
  0x29   : > { %p2859_p2 = scmp.ne.s32.totalorder %s3443_s3, %s2858_s27  ;;  %p2865_p10 = scmp.lt.u32.totalorder %s2858_s27, %s3443_s3 }
  0x2b   : > { %p2861_p1 = pnand %p2859_p2, %p2832_p13 }
  0x2d   : > { %p2862_p6 = pneg %p2861_p1 }
  0x2f   : > { %p2867_p3 = pnand %p2865_p10, %p2862_p6 }
  0x31   : > { %2870 = shalt.err (!%p2867_p3)
}
  0x32   : > { %s2871_s25 = scalar_lea.vmem %s3077_s28, 1024  ;;  %p2879_p12 = scmp.lt.s32.totalorder %s3077_s28, %s3077_s28 }
  0x33   : > { %p2872_p5 = scmp.ne.s32.totalorder %s3077_s28, %s2871_s25  ;;  %p2880_p0 = scmp.lt.s32.totalorder %s2871_s25, %s2871_s25 }
  0x35   : > { %p2874_p7 = pnand %p2872_p5, %p2832_p13  ;;  %p2881_p2 = por %p2880_p0, %p2879_p12 }
  0x37   : > { %p2875_p9 = pneg %p2874_p7 }
  0x39   : > { %p2882_p1 = pnand %p2881_p2, %p2875_p9 }
  0x3b   : > { %2885 = shalt.err (!%p2882_p1)
}
  0x3c   : > { %2756 = dma.hbm_to_vmem [thread:$0]  (!%p3073_p11), %s3443_s3, 1024, %s3077_s28, [#allocation6], %s2990_s11, %s2990_s11, %s2991_s12  }
  0x3d   : > { %s3132_s9 = sadd.s32 1, %s2986_s18   ;;  %s28_s26 = sadd.s32 1, %s2982_s17 }
  0x3e   : > { %s25_s10 = ssub.s32 %s2986_s18, %s3132_s9  ;;  %p35_p13 = scmp.ne.s32.totalorder %s2982_s17, %s2978_s16 }
  0x3f   : > { %p26_p6 = scmp.eq.s32.totalorder %s25_s10, 0  ;;  %p36_p10 = scmp.eq.s32.totalorder %s2986_s18, 0 }
  0x40   : > { %p3452_p3 = scmp.eq.s32.totalorder %s3043_s19, 1  ;;  %p2767_p7 = scmp.lt.s32.totalorder %s2986_s18, 2 }
  0x41   : > { %s3148_s14 = scalar_select %p26_p6, %s2982_s17, %s28_s26  }
  0x42   : > { %p3142_p5 = por %p3452_p3, %p35_p13  ;;  %p37_p9 = por %p36_p10, %p35_p13 }
  0x43   : > { %s183_s20 = sand.u32 1, %s2982_s17   ;;  %s2457_s28 = sshll.u32 %s2986_s18, 7 }
  0x44   : > { %s3453_s13 = scalar_select %p3142_p5, 1, 0 }
  0x45   : > { %s2456_s24 = sshll.u32 %s183_s20, 3  ;;  %s3155_s27 = scalar_lea.hbm %s3440_s0, %s2457_s28 }
  0x46   : > { %s187_s29 = scalar_lea.vmem [#allocation2], %s2456_s24  ;;  %p3159_p11 = pnand %p2767_p7, %p37_p9 }
  0x47   : > { %s194_s30 = sshll.u32 %s187_s29, 4  ;;  %s184_s6 = scalar_lea.sflag [#allocation3], %s183_s20  ;;  %s3157_s30 = int_to_ptr.vmem [resolvable:$true] %s194_s30 }
  0x48   : > { %s2886_s25 = scalar_lea.hbm %s3155_s27, 128  ;;  %p2888_p0 = pneg %p3159_p11 }
  0x49   : > { %p2887_p12 = scmp.ne.s32.totalorder %s3155_s27, %s2886_s25  ;;  %s2891_s26 = scalar_lea.hbm %s3440_s0, 256 }
  0x4a   : > { %p2892_p13 = scmp.lt.u32.totalorder %s3155_s27, %s3440_s0  ;;  %p2893_p6 = scmp.lt.u32.totalorder %s2891_s26, %s2886_s25 }
  0x4b   : > { %p2889_p2 = pnand %p2888_p0, %p2887_p12  ;;  %p2895_p3 = scmp.lt.u32.totalorder %s2886_s25, %s3155_s27 }
  0x4c   : > { %p2894_p10 = por %p2893_p6, %p2892_p13 }
  0x4d   : > { %p2890_p1 = pneg %p2889_p2 }
  0x4e   : > { %p2896_p7 = por %p2895_p3, %p2894_p10 }
  0x50   : > { %p2897_p9 = pnand %p2896_p7, %p2890_p1 }
  0x52   : > { %2900 = shalt.err (!%p2897_p9)
}
  0x53   : > { %s2901_s20 = scalar_lea.vmem %s3157_s30, 128  ;;  %s2992_s28 = smov [#allocation2]  }
  0x54   : > { %p2902_p12 = scmp.ne.s32.totalorder %s3157_s30, %s2901_s20  ;;  %s2906_s11 = sshll.u32 %s2992_s28, 4  ;;  %s2907_s11 = int_to_ptr.vmem [resolvable:$false] %s2906_s11 }
  0x55   : > { %s2908_s12 = scalar_lea.vmem %s2907_s11, 256  ;;  %p2909_p4 = scmp.lt.s32.totalorder %s3157_s30, %s2907_s11 }
  0x56   : > { %p2904_p2 = pnand %p2902_p12, %p2888_p0  ;;  %p2910_p13 = scmp.lt.s32.totalorder %s2908_s12, %s2901_s20 }
  0x58   : > { %p2905_p5 = pneg %p2904_p2  ;;  %p2911_p6 = por %p2910_p13, %p2909_p4 }
  0x5a   : > { %p2912_p10 = pnand %p2911_p6, %p2905_p5 }
  0x5c   : > { %2915 = shalt.err (!%p2912_p10)
}
  0x5d   : > { %2760 = dma.hbm_to_vmem [thread:$0]  (!%p3159_p11), %s3155_s27, 128, %s3157_s30, %s184_s6  }
  0x5e   : > { %203 = sbr.rel (%p3062_p8) target bundleno = 5011 (0x1393), region = 36  ;;  %s3191_s29 = sand.u32 (!%p3062_p8), 1, %s2978_s16  }
  0x5f   : > { %s2459_s25 = sshll.u32 (!%p3062_p8), %s3191_s29, 3  ;;  %s206_s7 = scalar_lea.sflag (!%p3062_p8), [#allocation3], %s3191_s29 }
  0x60   : > { %s209_s8 = scalar_lea.vmem (!%p3062_p8), [#allocation2], %s2459_s25  ;;  %p3455_p4 = scmp.ne.s32.totalorder (!%p3062_p8), %s3448_s21, 0 }
  0x65   : > { %2961 = dma.done.wait (%p3455_p4), %s206_s7, 128  }
  0x66   : > { %2963 = vsyncadd (%p3455_p4), %s206_s7, 4294967168  ;;  %p3456_p5 = scmp.eq.s32.totalorder %s3043_s19, 0 }
  0x68   : > { %2965 = dma.done.wait (%p3456_p5), [#allocation6], 3072   ;;  %p3457_p8 = pmov %p3456_p5 }
  0x69   : > { %vm250_vm0 = vcmask 261120   ;;  %v3205_v0 = vld [vmem:[%s209_s8] sm:$0xff]  ;;  %v2993_v7 = vmov 0.0   ;;  %v275_v8 = vld [vmem:[#allocation5] sm:$0xff]  ;;  %vm2994_vm1 = vmmov 0   ;;  %v277_v18 = vld [vmem:[#allocation5 + $0x8] sm:$0xff] }
  0x6a   : > { %2967 = vsyncadd (%p3457_p8), [#allocation6], 4294964224  ;;  %v251_v1 = vsel %vm250_vm0, %v3205_v0, 0.0  ;;  %2582 = vmatprep.subr.mxu0 %v2993_v7  ;;  %2597 = vmatprep.subr.mxu1 %v2993_v7  ;;  %v2463_v13 = vld [vmem:[%s3442_s2] ss:$0 sm:$0xff]  ;;  %vm509_vm2 = vcmask 64512  }
  0x6b   : > { %252 = vadd.xlane.f32.xlu0 %v251_v1  ;;  %2583 = vmatpush3.xpose.msk.msra.mxu0 %vm250_vm0, %v275_v8  ;;  %v2464_v15 = vld [vmem:[%s3442_s2 + $0x1] ss:$0 sm:$0xff]  ;;  %v2465_v22 = vld [vmem:[%s3442_s2 + $0x8] ss:$0 sm:$0xff]  ;;  %v671_v26 = vld [vmem:[#allocation5 + $0x20] sm:$0xff]  ;;  %vm2260_vm3 = vcmask 523264  }
  0x6c   : > { %2587 = vmatprep.subr.mxu0 %v2993_v7  ;;  %2584 = vmatprep.mubr.msk.f32.mxu0 %vm2994_vm1, %v2993_v7  ;;  %v279_v19 = vld [vmem:[#allocation5 + $0x10] sm:$0xff]  ;;  %v673_v45 = vld [vmem:[#allocation5 + $0x28] sm:$0xff]  ;;  %v2475_v48 = vld [vmem:[%s3442_s2 + $0x9] ss:$0 sm:$0xff]  ;;  %s2521_s10 = sshll.u32 %s3043_s19, 7  ;;  %s241_s24 = scalar_lea.vmem [#allocation8], %s2459_s25 }
  0x6d   : > { %2599 = vmatprep.mubr.msk.f32.mxu1 %vm2994_vm1, %v2993_v7  ;;  %v675_v29 = vld [vmem:[#allocation5 + $0x30] sm:$0xff]  ;;  %v677_v60 = vld [vmem:[#allocation5 + $0x38] sm:$0xff]  ;;  %vm2732_vm4 = vmpackc.low %vm2260_vm3, %vm2260_vm3  ;;  %s2362_s20 = sshll.u32 %s241_s24, 4  ;;  %s3395_s12 = scalar_lea.hbm %s3444_s4, %s2521_s10  ;;  %s3397_s20 = int_to_ptr.vmem [resolvable:$true] %s2362_s20 }
  0x6e   : > { %v281_v1 = vld [vmem:[#allocation5 + $0x18] sm:$0xff]  ;;  %s2349_s7 = scalar_lea.sflag [#allocation4], %s3191_s29  ;;  %s2916_s19 = scalar_lea.vmem %s3397_s20, 128 }
  0x6f   : > { %p2917_p11 = scmp.ne.s32.totalorder %s3397_s20, %s2916_s19  ;;  %p3458_p0 = scmp.ne.s32.totalorder %s3453_s13, 0 }
  0x70   : > { %s2996_s25 = smov [#allocation8]  }
  0x71   : > { %p2918_p1 = pnand %p2917_p11, %p3458_p0  ;;  %s2920_s8 = sshll.u32 %s2996_s25, 4  ;;  %s2921_s8 = int_to_ptr.vmem [resolvable:$false] %s2920_s8 }
  0x72   : > { %s2922_s21 = scalar_lea.vmem %s2921_s8, 256  ;;  %p2923_p7 = scmp.lt.s32.totalorder %s3397_s20, %s2921_s8 }
  0x73   : > { %p2919_p3 = pneg %p2918_p1  ;;  %p2924_p9 = scmp.lt.s32.totalorder %s2922_s21, %s2916_s19 }
  0x75   : > { %p2925_p12 = por %p2924_p9, %p2923_p7 }
  0x77   : > { %p2926_p2 = pnand %p2925_p12, %p2919_p3 }
  0xf8   : > { %v253_v2 = vpop.xlane.xlu0 %252 }
  0xf9   : > { %v255_v3 = vmul.f32 0.03125, %v253_v2  ;;  %v1211_v2 = vld [vmem:[#allocation5 + $0x48] sm:$0xff] }
  0xfb   : > { %v256_v4 = vsub.f32 %v3205_v0, %v255_v3  ;;  %v1209_v3 = vld [vmem:[#allocation5 + $0x40] sm:$0xff] }
  0xfd   : > { %v257_v5 = vmul.f32 %v256_v4, %v256_v4 }
  0xff   : > { %v258_v6 = vsel %vm250_vm0, %v257_v5, 0.0 }
 0x100   : > { %259 = vadd.xlane.f32.xlu0 %v258_v6  ;;  %v1213_v6 = vld [vmem:[#allocation5 + $0x50] sm:$0xff] }
 0x18d   : > { %v260_v9 = vpop.xlane.xlu0 %259 }
 0x18e   : > { %v261_v10 = vmul.f32 0.03125, %v260_v9 }
 0x190   : > { %v262_v11 = vadd.f32 1e-05, %v261_v10 }
 0x192   : > { %2810 = vrsqrt.f32 %v262_v11 }
 0x19c   : > { %v2811_v12 = vpop.eup %2810 }
 0x19d   : > { %v264_v14 = vmul.f32 %v2811_v12, %v256_v4 }
 0x19f   : > { %v269_v16 = vmul.f32 %v2463_v13, %v264_v14 }
 0x1a1   : > { %v3225_v17 = vadd.f32 %v2464_v15, %v269_v16  ;;  %v2487_v15 = vld [vmem:[%s3442_s2 + $0xa] ss:$0 sm:$0xff] }
 0x1a3   : > { %2585 = vmatmul.mubr.msk.f32.vlgmr.msra.gmra.mrb[0].mxu0 %vm250_vm0, %v3225_v17 }
 0x1a4   : > { %2588 = vmatpush3.xpose.msk.msra.mxu0 %vm250_vm0, %v277_v18  ;;  %2589 = vmatprep.mubr.msk.f32.mxu0 %vm2994_vm1, %v2993_v7 }
 0x1a5   : > { %2592 = vmatprep.subr.mxu0 %v2993_v7 }
 0x1a7   : > { %2590 = vmatmul.mubr.msk.f32.vlgmr.msra.gmra.mrb[2].mxu0 %vm250_vm0, %v3225_v17 }
 0x1a8   : > { %2593 = vmatpush3.xpose.msk.msra.mxu0 %vm250_vm0, %v279_v19  ;;  %2594 = vmatprep.mubr.msk.f32.mxu0 %vm2994_vm1, %v2993_v7 }
 0x1a9   : > { %2602 = vmatprep.subr.mxu0 %v2993_v7 }
 0x1ab   : > { %2595 = vmatmul.mubr.msk.f32.vlgmr.msra.gmra.mrb[4].mxu0 %vm250_vm0, %v3225_v17 }
 0x1ac   : > { %2604 = vmatprep.mubr.msk.f32.mxu0 %vm2994_vm1, %v2993_v7 }
 0x276   : > { %v359_v20 = vpop.f32.mrb[0].mxu0 }
 0x277   : > { %v2586_v21 = vpop.f32.mrb[1].mxu0  ;;  %v360_v25 = vadd.f32 %v2465_v22, %v359_v20 }
 0x27a   : > { %v432_v23 = vpop.f32.mrb[2].mxu0 }
 0x27b   : > { %v2591_v24 = vpop.f32.mrb[3].mxu0  ;;  %2598 = vmatpush3.xpose.msk.msra.mxu1 %vm509_vm2, %v432_v23 }
 0x27c   : > { %2607 = vmatprep.subr.mxu1 %v2993_v7 }
 0x27e   : > { %v505_v27 = vpop.f32.mrb[4].mxu0  ;;  %2600 = vmatmul.mubr.msk.f32.vlgmr.msra.gmra.mrb[0].mxu1 %vm509_vm2, %v360_v25 }
 0x27f   : > { %v2596_v28 = vpop.f32.mrb[5].mxu0  ;;  %2603 = vmatpush3.msra.mxu0 %v505_v27  ;;  %2608 = vmatpush3.xpose.msk.msra.mxu1 %vm250_vm0, %v671_v26 }
 0x280   : > { %2609 = vmatprep.mubr.msk.f32.mxu1 %vm2994_vm1, %v2993_v7  ;;  %2617 = vmatprep.subr.mxu1 %v2993_v7 }
 0x281   : > { %2612 = vmatprep.subr.mxu0 %v2993_v7 }
 0x282   : > { %2610 = vmatmul.mubr.msk.f32.vlgmr.msra.gmra.mrb[2].mxu1 %vm250_vm0, %v3225_v17 }
 0x283   : > { %2618 = vmatpush3.xpose.msk.msra.mxu1 %vm250_vm0, %v675_v29  ;;  %2619 = vmatprep.mubr.msk.f32.mxu1 %vm2994_vm1, %v2993_v7 }
 0x284   : > { %2627 = vmatprep.subr.mxu1 %v2993_v7 }
 0x286   : > { %2620 = vmatmul.mubr.msk.f32.vlgmr.msra.gmra.mrb[4].mxu1 %vm250_vm0, %v3225_v17 }
 0x287   : > { %2629 = vmatprep.mubr.msk.f32.mxu1 %vm2994_vm1, %v2993_v7 }
 0x351   : > { %v582_v30 = vpop.f32.mrb[0].mxu1 }
 0x352   : > { %v2601_v31 = vpop.f32.mrb[1].mxu1  ;;  %v586_v32 = vsel %vm509_vm2, %v582_v30, -inf }
 0x353   : > { %587 = vmax.xlane.f32.xlu1 %v586_v32 }
 0x355   : > { %v752_v33 = vpop.f32.mrb[2].mxu1 }
 0x356   : > { %v2611_v34 = vpop.f32.mrb[3].mxu1  ;;  %v753_v51 = vadd.f32 %v2475_v48, %v752_v33 }
 0x357   : > { %v1675_v34 = vld [vmem:[#allocation5 + $0x60] sm:$0xff] }
 0x359   : > { %v898_v35 = vpop.f32.mrb[4].mxu1 }
 0x35a   : > { %v2621_v36 = vpop.f32.mrb[5].mxu1  ;;  %2628 = vmatpush3.msra.mxu1 %v898_v35  ;;  %v1679_v35 = vld [vmem:[#allocation5 + $0x70] sm:$0xff] }
 0x35b   : > { %2637 = vmatprep.subr.mxu1 %v2993_v7  ;;  %v1677_v36 = vld [vmem:[#allocation5 + $0x68] sm:$0xff] }
 0x3e0   : > { %v588_v37 = vpop.xlane.xlu1 %587 }
 0x3e1   : > { %v589_v38 = vsub.f32 %v582_v30, %v588_v37  ;;  %v1215_v30 = vld [vmem:[#allocation5 + $0x58] sm:$0xff] }
 0x3e3   : > { %v590_v39 = vmul.f32 1.442695, %v589_v38 }
 0x3e5   : > { %2812 = vpow2.f32 %v590_v39 }
 0x3ef   : > { %v2813_v40 = vpop.eup %2812 }
 0x3f0   : > { %v592_v41 = vsel %vm509_vm2, %v2813_v40, 0.0 }
 0x3f1   : > { %593 = vadd.xlane.f32.xlu1 %v592_v41 }
 0x47e   : > { %v594_v42 = vpop.xlane.xlu1 %593 }
 0x47f   : > { %2814 = vrcp.f32 %v594_v42 }
 0x489   : > { %v2815_v43 = vpop.eup %2814 }
 0x48a   : > { %v596_v44 = vmul.f32 %v2815_v43, %v2813_v40 }
 0x48c   : > { %2605 = vmatmul.mubr.msk.f32.vlgmr.msra.gmra.mrb[6].mxu0 %vm509_vm2, %v596_v44 }
 0x48d   : > { %2613 = vmatpush3.xpose.msk.msra.mxu0 %vm250_vm0, %v673_v45  ;;  %2614 = vmatprep.mubr.msk.f32.mxu0 %vm2994_vm1, %v2993_v7 }
 0x48e   : > { %2622 = vmatprep.subr.mxu0 %v2993_v7 }
 0x490   : > { %2615 = vmatmul.mubr.msk.f32.vlgmr.msra.gmra.mrb[8].mxu0 %vm250_vm0, %v3225_v17 }
 0x491   : > { %2624 = vmatprep.mubr.msk.f32.mxu0 %vm2994_vm1, %v2993_v7 }
 0x55f   : > { %v666_v46 = vpop.f32.mrb[6].mxu0 }
 0x560   : > { %v2606_v47 = vpop.f32.mrb[7].mxu0 }
 0x563   : > { %v825_v49 = vpop.f32.mrb[8].mxu0 }
 0x564   : > { %v2616_v50 = vpop.f32.mrb[9].mxu0  ;;  %2623 = vmatpush3.xpose.msk.msra.mxu0 %vm509_vm2, %v825_v49 }
 0x565   : > { %2632 = vmatprep.subr.mxu0 %v2993_v7 }
 0x567   : > { %2625 = vmatmul.mubr.msk.f32.vlgmr.msra.gmra.mrb[10].mxu0 %vm509_vm2, %v753_v51 }
 0x568   : > { %2634 = vmatprep.mubr.msk.f32.mxu0 %vm2994_vm1, %v2993_v7  ;;  %2633 = vmatpush3.msra.mxu0 %v677_v60 }
 0x569   : > { %2642 = vmatprep.subr.mxu0 %v2993_v7 }
 0x63a   : > { %v974_v52 = vpop.f32.mrb[10].mxu0 }
 0x63b   : > { %v2626_v53 = vpop.f32.mrb[11].mxu0  ;;  %v978_v54 = vsel %vm509_vm2, %v974_v52, -inf }
 0x63c   : > { %979 = vmax.xlane.f32.xlu0 %v978_v54 }
 0x6c9   : > { %v980_v55 = vpop.xlane.xlu0 %979 }
 0x6ca   : > { %v981_v56 = vsub.f32 %v974_v52, %v980_v55 }
 0x6cc   : > { %v982_v57 = vmul.f32 1.442695, %v981_v56 }
 0x6ce   : > { %2816 = vpow2.f32 %v982_v57  ;;  %v1681_v57 = vld [vmem:[#allocation5 + $0x78] sm:$0xff] }
 0x6d8   : > { %v2817_v58 = vpop.eup %2816 }
 0x6d9   : > { %v984_v59 = vsel %vm509_vm2, %v2817_v58, 0.0 }
 0x6da   : > { %985 = vadd.xlane.f32.xlu1 %v984_v59 }
 0x767   : > { %v986_v61 = vpop.xlane.xlu1 %985 }
 0x768   : > { %2818 = vrcp.f32 %v986_v61 }
 0x772   : > { %v2819_v62 = vpop.eup %2818 }
 0x773   : > { %v988_v63 = vmul.f32 %v2819_v62, %v2817_v58 }
 0x775   : > { %2630 = vmatmul.mubr.msk.f32.vlgmr.msra.gmra.mrb[6].mxu1 %vm509_vm2, %v988_v63 }
 0x776   : > { %2638 = vmatpush3.msra.mxu1 %v281_v1  ;;  %2639 = vmatprep.mubr.msk.f32.mxu1 %vm2994_vm1, %v2993_v7 }
 0x777   : > { %2647 = vmatprep.subr.mxu1 %v2993_v7 }
 0x779   : > { %2640 = vmatmul.mubr.msk.f32.vlgmr.msra.gmra.mrb[8].mxu1 %vm509_vm2, %v666_v46  ;;  %v2498_v46 = vld [vmem:[%s3442_s2 + $0xb] ss:$0 sm:$0xff] }
 0x77a   : > { %2649 = vmatprep.mubr.msk.f32.mxu1 %vm2994_vm1, %v2993_v7 }
 0x77d   : > { %2648 = vmatpush3.xpose.msk.msra.mxu1 %vm250_vm0, %v1211_v2 }
 0x77e   : > { %2657 = vmatprep.subr.mxu1 %v2993_v7 }
 0x780   : > { %2650 = vmatmul.mubr.msk.f32.vlgmr.msra.gmra.mrb[10].mxu1 %vm250_vm0, %v3225_v17 }
 0x781   : > { %2659 = vmatprep.mubr.msk.f32.mxu1 %vm2994_vm1, %v2993_v7 }
 0x848   : > { %v1058_v4 = vpop.f32.mrb[6].mxu1 }
 0x849   : > { %v2631_v5 = vpop.f32.mrb[7].mxu1  ;;  %2635 = vmatmul.mubr.msk.f32.vlgmr.msra.gmra.mrb[12].mxu0 %vm509_vm2, %v1058_v4 }
 0x84a   : > { %2643 = vmatpush3.xpose.msk.msra.mxu0 %vm250_vm0, %v1209_v3  ;;  %2644 = vmatprep.mubr.msk.f32.mxu0 %vm2994_vm1, %v2993_v7  ;;  %v2509_v3 = vld [vmem:[%s3442_s2 + $0x4] ss:$0 sm:$0xff] }
 0x84b   : > { %2652 = vmatprep.subr.mxu0 %v2993_v7 }
 0x84c   : > { %v1204_v8 = vpop.f32.mrb[8].mxu1 }
 0x84d   : > { %v2641_v9 = vpop.f32.mrb[9].mxu1  ;;  %2645 = vmatmul.mubr.msk.f32.vlgmr.msra.gmra.mrb[14].mxu0 %vm250_vm0, %v3225_v17 }
 0x84e   : > { %2653 = vmatpush3.xpose.msk.msra.mxu0 %vm250_vm0, %v1213_v6  ;;  %2654 = vmatprep.mubr.msk.f32.mxu0 %vm2994_vm1, %v2993_v7 }
 0x84f   : > { %2662 = vmatprep.subr.mxu0 %v2993_v7 }
 0x851   : > { %2655 = vmatmul.mubr.msk.f32.vlgmr.msra.gmra.mrb[16].mxu0 %vm250_vm0, %v3225_v17 }
 0x852   : > { %2664 = vmatprep.mubr.msk.f32.mxu0 %vm2994_vm1, %v2993_v7 }
 0x853   : > { %v1363_v10 = vpop.f32.mrb[10].mxu1 }
 0x854   : > { %v2651_v11 = vpop.f32.mrb[11].mxu1  ;;  %2658 = vmatpush3.xpose.msk.msra.mxu1 %vm509_vm2, %v1363_v10 }
 0x855   : > { %2667 = vmatprep.subr.mxu1 %v2993_v7 }
 0x91c   : > { %v1131_v12 = vpop.f32.mrb[12].mxu0 }
 0x91d   : > { %v1205_v13 = vadd.f32 %v1204_v8, %v1131_v12  ;;  %v2636_v14 = vpop.f32.mrb[13].mxu0 }
 0x920   : > { %v1290_v16 = vpop.f32.mrb[14].mxu0 }
 0x921   : > { %v1291_v18 = vadd.f32 %v2487_v15, %v1290_v16  ;;  %v2646_v19 = vpop.f32.mrb[15].mxu0  ;;  %v2995_v15 = vmov 0.0|0.0   ;;  %v2172_v16 = vld [vmem:[#allocation7 + $0x18] sm:$0xff] }
 0x922   : > { %v2252_v19 = vld [vmem:[#allocation7 + $0x20] sm:$0xff] }
 0x923   : > { %2660 = vmatmul.mubr.msk.f32.vlgmr.msra.gmra.mrb[12].mxu1 %vm509_vm2, %v1291_v18 }
 0x924   : > { %v1436_v20 = vpop.f32.mrb[16].mxu0  ;;  %2669 = vmatprep.mubr.msk.f32.mxu1 %vm2994_vm1, %v2993_v7  ;;  %2668 = vmatpush3.msra.mxu1 %v1215_v30 }
 0x925   : > { %v2656_v21 = vpop.f32.mrb[17].mxu0  ;;  %2663 = vmatpush3.msra.mxu0 %v1436_v20  ;;  %2677 = vmatprep.subr.mxu1 %v2993_v7  ;;  %v2253_v20 = vld [vmem:[#allocation7 + $0x28] sm:$0xff] }
 0x926   : > { %2672 = vmatprep.subr.mxu0 %v2993_v7  ;;  %v2731_v21 = vpack.c.bf16 %v2253_v20, %v2252_v19 }
 0x9f6   : > { %v1512_v22 = vpop.f32.mrb[12].mxu1 }
 0x9f7   : > { %v2661_v23 = vpop.f32.mrb[13].mxu1  ;;  %v1516_v24 = vsel %vm509_vm2, %v1512_v22, -inf }
 0x9f8   : > { %1517 = vmax.xlane.f32.xlu0 %v1516_v24  ;;  %v2255_v23 = vld [vmem:[#allocation7 + $0x38] sm:$0xff] }
 0xa85   : > { %v1518_v25 = vpop.xlane.xlu0 %1517 }
 0xa86   : > { %v1519_v26 = vsub.f32 %v1512_v22, %v1518_v25  ;;  %v2254_v22 = vld [vmem:[#allocation7 + $0x30] sm:$0xff] }
 0xa87   : > { %v2735_v24 = vpack.c.bf16 %v2255_v23, %v2254_v22 }
 0xa88   : > { %v1520_v27 = vmul.f32 1.442695, %v1519_v26 }
 0xa8a   : > { %2820 = vpow2.f32 %v1520_v27 }
 0xa94   : > { %v2821_v28 = vpop.eup %2820 }
 0xa95   : > { %v1522_v29 = vsel %vm509_vm2, %v2821_v28, 0.0 }
 0xa96   : > { %1523 = vadd.xlane.f32.xlu1 %v1522_v29  ;;  %v2510_v29 = vld [vmem:[%s3442_s2 + $0x2] ss:$0 sm:$0xff] }
 0xb23   : > { %v1524_v31 = vpop.xlane.xlu1 %1523 }
 0xb24   : > { %2822 = vrcp.f32 %v1524_v31  ;;  %v2511_v31 = vld [vmem:[%s3442_s2 + $0x3] ss:$0 sm:$0xff] }
 0xb2e   : > { %v2823_v32 = vpop.eup %2822 }
 0xb2f   : > { %v1526_v33 = vmul.f32 %v2823_v32, %v2821_v28 }
 0xb31   : > { %2665 = vmatmul.mubr.msk.f32.vlgmr.msra.gmra.mrb[18].mxu0 %vm509_vm2, %v1526_v33 }
 0xb32   : > { %2673 = vmatpush3.xpose.msk.msra.mxu0 %vm250_vm0, %v1675_v34  ;;  %2674 = vmatprep.mubr.msk.f32.mxu0 %vm2994_vm1, %v2993_v7  ;;  %v2512_v34 = vld [vmem:[%s3442_s2 + $0x5] ss:$0 sm:$0xff] }
 0xb33   : > { %2682 = vmatprep.subr.mxu0 %v2993_v7 }
 0xb35   : > { %2675 = vmatmul.mubr.msk.f32.vlgmr.msra.gmra.mrb[20].mxu0 %vm250_vm0, %v3225_v17 }
 0xb36   : > { %2683 = vmatpush3.xpose.msk.msra.mxu0 %vm250_vm0, %v1679_v35  ;;  %2684 = vmatprep.mubr.msk.f32.mxu0 %vm2994_vm1, %v2993_v7 }
 0xb37   : > { %2692 = vmatprep.subr.mxu0 %v2993_v7 }
 0xb39   : > { %2685 = vmatmul.mubr.msk.f32.vlgmr.msra.gmra.mrb[22].mxu0 %vm250_vm0, %v3225_v17 }
 0xb3a   : > { %2694 = vmatprep.mubr.msk.f32.mxu0 %vm2994_vm1, %v2993_v7 }
 0xc04   : > { %v1596_v37 = vpop.f32.mrb[18].mxu0 }
 0xc05   : > { %v2666_v38 = vpop.f32.mrb[19].mxu0  ;;  %2670 = vmatmul.mubr.msk.f32.vlgmr.msra.gmra.mrb[14].mxu1 %vm509_vm2, %v1596_v37 }
 0xc06   : > { %2678 = vmatpush3.xpose.msk.msra.mxu1 %vm250_vm0, %v1677_v36  ;;  %2679 = vmatprep.mubr.msk.f32.mxu1 %vm2994_vm1, %v2993_v7 }
 0xc07   : > { %2687 = vmatprep.subr.mxu1 %v2993_v7 }
 0xc08   : > { %v1756_v39 = vpop.f32.mrb[20].mxu0 }
 0xc09   : > { %v2676_v40 = vpop.f32.mrb[21].mxu0  ;;  %2680 = vmatmul.mubr.msk.f32.vlgmr.msra.gmra.mrb[16].mxu1 %vm250_vm0, %v3225_v17  ;;  %v1757_v49 = vadd.f32 %v2498_v46, %v1756_v39  ;;  %v2514_v39 = vld [vmem:[%s3442_s2 + $0x6] ss:$0 sm:$0xff] }
 0xc0a   : > { %2689 = vmatprep.mubr.msk.f32.mxu1 %vm2994_vm1, %v2993_v7 }
 0xc0c   : > { %v1902_v41 = vpop.f32.mrb[22].mxu0 }
 0xc0d   : > { %v2686_v42 = vpop.f32.mrb[23].mxu0  ;;  %2693 = vmatpush3.msra.mxu0 %v1902_v41 }
 0xc0e   : > { %2724 = vmatprep.subr.bf16.mxu0 %v2995_v15 }
 0xcd8   : > { %v1669_v43 = vpop.f32.mrb[14].mxu1 }
 0xcd9   : > { %v1673_v44 = vadd.f32 %v1669_v43, %v1205_v13  ;;  %v2671_v45 = vpop.f32.mrb[15].mxu1  ;;  %v2170_v13 = vld [vmem:[#allocation7 + $0x8] sm:$0xff] }
 0xcdc   : > { %v1829_v47 = vpop.f32.mrb[16].mxu1 }
 0xcdd   : > { %v2681_v48 = vpop.f32.mrb[17].mxu1  ;;  %2688 = vmatpush3.xpose.msk.msra.mxu1 %vm509_vm2, %v1829_v47 }
 0xcde   : > { %2697 = vmatprep.subr.mxu1 %v2993_v7 }
 0xce0   : > { %2690 = vmatmul.mubr.msk.f32.vlgmr.msra.gmra.mrb[18].mxu1 %vm509_vm2, %v1757_v49 }
 0xce1   : > { %2699 = vmatprep.mubr.msk.f32.mxu1 %vm2994_vm1, %v2993_v7  ;;  %2698 = vmatpush3.msra.mxu1 %v1681_v57 }
 0xce2   : > { %2730 = vmatprep.subr.bf16.mxu1 %v2995_v15 }
 0xdb3   : > { %v1978_v17 = vpop.f32.mrb[18].mxu1 }
 0xdb4   : > { %v2691_v50 = vpop.f32.mrb[19].mxu1  ;;  %v1982_v51 = vsel %vm509_vm2, %v1978_v17, -inf }
 0xdb5   : > { %1983 = vmax.xlane.f32.xlu0 %v1982_v51 }
 0xe42   : > { %v1984_v52 = vpop.xlane.xlu0 %1983 }
 0xe43   : > { %v1985_v53 = vsub.f32 %v1978_v17, %v1984_v52 }
 0xe45   : > { %v1986_v54 = vmul.f32 1.442695, %v1985_v53 }
 0xe47   : > { %2824 = vpow2.f32 %v1986_v54 }
 0xe51   : > { %v2825_v55 = vpop.eup %2824 }
 0xe52   : > { %v1988_v56 = vsel %vm509_vm2, %v2825_v55, 0.0 }
 0xe53   : > { %1989 = vadd.xlane.f32.xlu1 %v1988_v56 }
 0xee0   : > { %v1990_v58 = vpop.xlane.xlu1 %1989 }
 0xee1   : > { %2826 = vrcp.f32 %v1990_v58 }
 0xeeb   : > { %v2827_v59 = vpop.eup %2826 }
 0xeec   : > { %v1992_v60 = vmul.f32 %v2827_v59, %v2825_v55 }
 0xeee   : > { %2695 = vmatmul.mubr.msk.f32.vlgmr.msra.gmra.mrb[24].mxu0 %vm509_vm2, %v1992_v60 }
 0xeef   : > { %2710 = vmatprep.mubr.msk.f32.mxu0 %vm2994_vm1, %v2993_v7 }
 0xfc1   : > { %v2062_v61 = vpop.f32.mrb[24].mxu0 }
 0xfc2   : > { %v2696_v62 = vpop.f32.mrb[25].mxu0  ;;  %2700 = vmatmul.mubr.msk.f32.vlgmr.msra.gmra.mrb[20].mxu1 %vm509_vm2, %v2062_v61 }
 0xfc3   : > { %2721 = vmatprep.mubr.msk.f32.mxu1 %vm2994_vm1, %v2993_v7  ;;  %v2169_v7 = vld [vmem:[#allocation7] sm:$0xff]  ;;  %2733 = vmatpush3.bf16.xpose.msk.msra.mxu1 %vm2732_vm4, %v2731_v21 }
 0xfc4   : > { %v2725_v14 = vpack.c.bf16 %v2170_v13, %v2169_v7  ;;  %2734 = vmatprep.subr.bf16.mxu1 %v2995_v15 }
 0xfc6   : > { %2726 = vmatpush3.bf16.msra.mxu0 %v2725_v14 }
 0xfc7   : > { %2727 = vmatprep.subr.bf16.mxu0 %v2995_v15 }
 0xfcb   : > { %2737 = vmatpush3.bf16.xpose.msk.msra.mxu1 %vm2732_vm4, %v2735_v24 }
0x1095   : > { %v2135_v63 = vpop.f32.mrb[20].mxu1 }
0x1096   : > { %v2139_v1 = vadd.f32 %v2135_v63, %v1673_v44  ;;  %v2701_v2 = vpop.f32.mrb[21].mxu1 }
0x1098   : > { %v2140_v4 = vadd.f32 %v2139_v1, %v3205_v0  ;;  %v2171_v0 = vld [vmem:[#allocation7 + $0x10] sm:$0xff] }
0x1099   : > { %v2728_v18 = vpack.c.bf16 %v2172_v16, %v2171_v0 }
0x109a   : > { %v2145_v5 = vadd.f32 %v2509_v3, %v2140_v4 }
0x109b   : > { %2729 = vmatpush3.bf16.msra.mxu0 %v2728_v18 }
0x109c   : > { %v2146_v6 = vsel %vm250_vm0, %v2145_v5, 0.0 }
0x109d   : > { %2147 = vadd.xlane.f32.xlu0 %v2146_v6 }
0x112a   : > { %v2148_v8 = vpop.xlane.xlu0 %2147 }
0x112b   : > { %v2149_v9 = vmul.f32 0.03125, %v2148_v8 }
0x112d   : > { %v2150_v10 = vsub.f32 %v2145_v5, %v2149_v9 }
0x112f   : > { %v2151_v11 = vmul.f32 %v2150_v10, %v2150_v10 }
0x1131   : > { %v2152_v12 = vsel %vm250_vm0, %v2151_v11, 0.0 }
0x1132   : > { %2153 = vadd.xlane.f32.xlu1 %v2152_v12 }
0x11bf   : > { %v2154_v25 = vpop.xlane.xlu1 %2153 }
0x11c0   : > { %v2155_v26 = vmul.f32 0.03125, %v2154_v25 }
0x11c2   : > { %v2156_v27 = vadd.f32 1e-05, %v2155_v26 }
0x11c4   : > { %2828 = vrsqrt.f32 %v2156_v27 }
0x11ce   : > { %v2829_v28 = vpop.eup %2828 }
0x11cf   : > { %v2158_v30 = vmul.f32 %v2829_v28, %v2150_v10 }
0x11d1   : > { %v2163_v32 = vmul.f32 %v2510_v29, %v2158_v30 }
0x11d3   : > { %v2168_v33 = vadd.f32 %v2511_v31, %v2163_v32 }
0x11d5   : > { %2711 = vmatmul.mubr.msk.f32.vlgmr.msra.gmra.mrb[26].mxu0 %vm250_vm0, %v2168_v33 }
0x12a8   : > { %v2246_v35 = vpop.f32.mrb[26].mxu0 }
0x12a9   : > { %v2247_v36 = vadd.f32 %v2512_v34, %v2246_v35  ;;  %v2712_v37 = vpop.f32.mrb[27].mxu0 }
0x12ab   : > { %v2250_v38 = vmax.f32 %v2247_v36, 0.0 }
0x12ad   : > { %2722 = vmatmul.mubr.msk.f32.vlgmr.msra.gmra.mrb[22].mxu1 %vm2260_vm3, %v2250_v38 }
0x1380   : > { %v2342_v40 = vpop.f32.mrb[22].mxu1 }
0x1381   : > { %v2343_v41 = vadd.f32 %v2514_v39, %v2342_v40  ;;  %v2723_v42 = vpop.f32.mrb[23].mxu1 }
0x1383   : > { %v2346_v43 = vadd.f32 %v2343_v41, %v2145_v5 }
0x1385   : > { %2347 = vst.msk [vmem:[%s241_s24] sm:$0xff] %vm250_vm0, %v2346_v43 }
0x1386   : > { %2929 = shalt.err (!%p2926_p2)
}
0x1387   : > { %s2930_s29 = scalar_lea.hbm %s3395_s12, 128  ;;  %s2934_s30 = scalar_lea.hbm %s3444_s4, 256 }
0x1388   : > { %p2931_p13 = scmp.ne.s32.totalorder %s3395_s12, %s2930_s29  ;;  %p2935_p4 = scmp.lt.u32.totalorder %s3395_s12, %s3444_s4 }
0x1389   : > { %p2936_p5 = scmp.lt.u32.totalorder %s2934_s30, %s2930_s29  ;;  %p2938_p11 = scmp.lt.u32.totalorder %s2930_s29, %s3395_s12 }
0x138a   : > { %p2932_p6 = pnand %p2931_p13, %p3458_p0 }
0x138b   : > { %p2937_p8 = por %p2936_p5, %p2935_p4 }
0x138c   : > { %p2933_p10 = pneg %p2932_p6 }
0x138d   : > { %p2939_p1 = por %p2938_p11, %p2937_p8 }
0x138f   : > { %p2940_p3 = pnand %p2939_p1, %p2933_p10 }
0x1391   : > { %2943 = shalt.err (!%p2940_p3)
}
0x1392   : > { %2748 = dma.vmem_to_hbm [thread:$0]  (%p3458_p0), %s3397_s20, 128, %s3395_s12, %s2349_s7  }
0x1393 PF: > { %s2374_s26 = sand.u32 1, %s2974_s15   ;;  %p3459_p7 = scmp.ne.s32.totalorder %s3449_s22, 0 }
0x1394   : > { %p3460_p9 = scmp.ge.s32.totalorder %s2986_s18, 2  ;;  %s2375_s10 = scalar_lea.sflag [#allocation4], %s2374_s26 }
0x1396   : > { %p2762_p12 = pnand %p3460_p9, %p3459_p7 }
0x1398   : > { %2969 = dma.done.wait (!%p2762_p12), %s2375_s10, 128  }
0x1399   : > { %2971 = vsyncadd (!%p2762_p12), %s2375_s10, 4294967168  ;;  %p18_p2 = scmp.ge.s32.totalorder %s3132_s9, 4   ;;  %s3461_s15 = smov %s2978_s16 }
0x139a   : > { %s3462_s16 = smov %s2982_s17  ;;  %s3463_s17 = smov %s3148_s14 }
0x139b   : > { %s3464_s18 = smov %s3132_s9  ;;  %20 = sbr.rel (!%p18_p2) target bundleno = 6 (0x6), region = 105 }
0x13a2   :  { %2380 = vsyncpa [#allocation3], 1 }
0x13a3   :  { %2382 = vsyncpa [#allocation3 + $0x1], 1 }
0x13a4   :  { %2383 = vsyncpa [#allocation6], 1 }
0x13a5   :  { %2384 = vsyncpa [#allocation4], 1 }
0x13a6   :  { %2386 = vsyncpa [#allocation4 + $0x1], 1 }

</bundles_post_ra>
